<compile_context>
chip_gen: v7x
topology: tpu7x:2x2x1
jax: 0.10.0
libtpu: 0.0.40
codegen_flags: <defaults>
</compile_context>

<pallas_src>
import functools

import jax
import jax.numpy as jnp
import numpy as np
from jax import lax
from jax.experimental import pallas as pl
from jax.experimental.pallas import tpu as pltpu

_LANES = 128
_SUBLANES = 8
_TARGET_TILE_BYTES = 4 * 1024 * 1024   # per input per pipeline buffer
_VMEM_LIMIT_BYTES = 32 * 1024 * 1024   # 2 inputs x 2 buffers x 4 MiB + headroom


def _round_up(x, m):
    return ((x + m - 1) // m) * m


def _num_parallel_splits():
    """2 on v7x-class chips (per-TC HBM bandwidth), else 1."""
    try:
        kind = jax.devices()[0].device_kind.lower()
    except Exception:  # pragma: no cover - conservative fallback
        return 1
    return 2 if ("v7" in kind or "7x" in kind) else 1


def _mse_sum_kernel(x_ref, y_ref, o_ref, acc_ref, *, block_rows,
                    blocks_per_split, num_blocks, valid_rows,
                    need_mask, has_phantom):
    s = pl.program_id(0)          # TensorCore split index
    k = pl.program_id(1)          # row-tile index within this split

    @pl.when(k == 0)
    def _():
        acc_ref[...] = jnp.zeros_like(acc_ref)

    b = s * blocks_per_split + k  # global row-tile index (may be phantom)

    def accumulate(mask_rows):
        d = x_ref[...].astype(jnp.float32) - y_ref[...].astype(jnp.float32)
        dsq = d * d
        if mask_rows:
            # Only the (single) ragged last tile pays for the mask.
            row_ids = (lax.broadcasted_iota(jnp.int32, dsq.shape, 0)
                       + b * block_rows)
            dsq = jnp.where(row_ids < valid_rows, dsq, 0.0)
        # Lane-parallel accumulation: collapse the row axis vreg-tile-wise into
        # an (8, 128) accumulator (pure VPU adds; no per-step cross-lane work).
        acc_ref[...] += dsq.reshape(
            block_rows // _SUBLANES, _SUBLANES, _LANES).sum(axis=0)

    if need_mask:
        last = num_blocks - 1
        # Steady-state tiles: no mask.  Phantom tiles (b > last) do nothing.
        @pl.when(b < last)
        def _():
            accumulate(False)

        @pl.when(b == last)
        def _():
            accumulate(True)
    else:
        if has_phantom:
            @pl.when(b < num_blocks)
            def _():
                accumulate(False)
        else:
            accumulate(False)

    @pl.when(k == pl.num_programs(1) - 1)
    def _():
        # One sublane reduce per split; final cross-lane sum + divide happen
        # in the wrapper on the lane-dense (nsplit, 128) partials.
        o_ref[...] = acc_ref[...].sum(axis=0, keepdims=True)


def master_loss(img1, img2, *, force_nsplit=None, max_block_rows=None):
    """Pallas equivalent of MasterLoss.forward. Returns a (1,) f32 array."""
    assert img1.shape == img2.shape
    total = int(np.prod(img1.shape))
    inv_denom = 1.0 / float(total)

    x = img1.reshape(total)
    y = img2.reshape(total)

    rows = total // _LANES
    aligned = rows * _LANES
    tail = total - aligned          # < 128 leftover elements (usually 0)

    tail_sum = None
    if tail:
        xt = x[aligned:].astype(jnp.float32)
        yt = y[aligned:].astype(jnp.float32)
        tail_sum = jnp.sum((xt - yt) ** 2)

    if rows == 0:
        # Tiny input: everything is handled by the tail path.
        return (tail_sum * jnp.float32(inv_denom)).reshape(1)

    if tail:
        # Only taken when total is not a multiple of 128 (rare for images);
        # this prefix slice is the one place XLA may introduce a copy.
        x = x[:aligned]
        y = y[:aligned]
    x2 = x.reshape(rows, _LANES)
    y2 = y.reshape(rows, _LANES)

    # Dtype-aware tile size: ~4 MiB per input per pipeline buffer.
    itemsize = int(jnp.dtype(img1.dtype).itemsize)
    target_rows = max(
        _SUBLANES,
        (_TARGET_TILE_BYTES // (_LANES * itemsize)) // _SUBLANES * _SUBLANES)
    if max_block_rows is not None:
        target_rows = min(target_rows, int(max_block_rows))
    block_rows = min(target_rows, _round_up(rows, _SUBLANES))
    num_blocks = -(-rows // block_rows)

    # Split row tiles across the two TensorCores on v7x whenever there are at
    # least two tiles.  Odd counts use a clamped phantom tile that is skipped.
    nsplit = _num_parallel_splits() if force_nsplit is None else int(force_nsplit)
    nsplit = max(1, min(nsplit, num_blocks))
    bps = -(-num_blocks // nsplit)
    has_phantom = (nsplit * bps) != num_blocks
    need_mask = (rows % block_rows) != 0

    if has_phantom:
        def in_map(s, k, _bps=bps, _last=num_blocks - 1):
            # Phantom tiles re-read the last real tile (in-bounds DMA); their
            # contribution is discarded in-kernel.
            return (jnp.minimum(s * _bps + k, _last), 0)
    else:
        def in_map(s, k, _bps=bps):
            return (s * _bps + k, 0)

    kernel = functools.partial(
        _mse_sum_kernel,
        block_rows=block_rows,
        blocks_per_split=bps,
        num_blocks=num_blocks,
        valid_rows=rows,
        need_mask=need_mask,
        has_phantom=has_phantom,
    )

    cost = pl.CostEstimate(
        flops=3 * total,
        transcendentals=0,
        bytes_accessed=2 * rows * _LANES * itemsize + nsplit * _LANES * 4,
    )

    partials = pl.pallas_call(
        kernel,
        out_shape=jax.ShapeDtypeStruct((nsplit, _LANES), jnp.float32),
        grid=(nsplit, bps),
        in_specs=[
            pl.BlockSpec((block_rows, _LANES), in_map),
            pl.BlockSpec((block_rows, _LANES), in_map),
        ],
        out_specs=pl.BlockSpec((1, _LANES), lambda s, k: (s, 0)),
        scratch_shapes=[pltpu.VMEM((_SUBLANES, _LANES), jnp.float32)],
        compiler_params=pltpu.CompilerParams(
            dimension_semantics=("parallel", "arbitrary"),
            vmem_limit_bytes=_VMEM_LIMIT_BYTES),
        cost_estimate=cost,
    )(x2, y2)

    total_sq = jnp.sum(partials)
    if tail:
        total_sq = total_sq + tail_sum
    return (total_sq * jnp.float32(inv_denom)).reshape(1)


# TODO(synk): SSIM is instantiated by MasterLoss.__init__ but never used in
# forward(), so no SSIM (grouped-conv) kernel is emitted here.


def _reference_loss(img1, img2):
    a = img1.astype(jnp.float32)
    b = img2.astype(jnp.float32)
    per_sample = jnp.mean((a - b) ** 2, axis=tuple(range(1, a.ndim)))
    return jnp.mean(per_sample)


if __name__ == "__main__":
    key = jax.random.PRNGKey(0)

    def run_case(seed, shape, dtype, **kwargs):
        k1, k2 = jax.random.split(jax.random.fold_in(key, seed))
        a = jax.random.normal(k1, shape, dtype=jnp.float32).astype(dtype)
        b = jax.random.normal(k2, shape, dtype=jnp.float32).astype(dtype)
        out = jax.block_until_ready(master_loss(a, b, **kwargs))
        ref = _reference_loss(a, b)
        np.testing.assert_allclose(
            np.asarray(out)[0], np.asarray(ref), rtol=1e-5, atol=1e-6)

    # Primary case (matches the module's NCHW image usage).
    run_case(0, (2, 4, 16, 16), jnp.float32)
    # bf16 inputs (dtype-aware tiling, in-kernel upcast).
    run_case(1, (2, 4, 16, 16), jnp.bfloat16)
    # Non-128-multiple total: ragged last row tile + wrapper tail + 2-way split.
    run_case(2, (3, 4, 16, 17), jnp.float32, force_nsplit=2, max_block_rows=8)
    # Odd tile count: phantom tile on the second split is clamped and skipped.
    run_case(3, (3, 4, 16, 16), jnp.float32, force_nsplit=2, max_block_rows=8)

    print("KERNEL_OK")
</pallas_src>

<mosaic_0001>
module attributes {stable_mosaic.version = 11 : i64} {
  func.func @_mse_sum_kernel(%arg0: i32, %arg1: i32, %arg2: memref<16x128xf32, #tpu.memory_space<vmem>>, %arg3: memref<16x128xf32, #tpu.memory_space<vmem>>, %arg4: memref<1x128xf32, #tpu.memory_space<vmem>>, %arg5: memref<8x128xf32, #tpu.memory_space<vmem>>) attributes {dimension_semantics = [#tpu.dimension_semantics<parallel>, #tpu.dimension_semantics<arbitrary>], iteration_bounds = array<i64: 1, 1>, scalar_prefetch = 0 : i64, scratch_operands = 1 : i64, tpu.core_type = #tpu.core_type<tc>, window_params = [{transform_indices = @transform_0, window_bounds = array<i64: 16, 128>}, {transform_indices = @transform_1, window_bounds = array<i64: 16, 128>}, {transform_indices = @transform_2, window_bounds = array<i64: 1, 128>}]} {
    %c0_i32 = arith.constant 0 : i32
    %0 = arith.cmpi eq, %arg1, %c0_i32 : i32
    %1 = arith.extui %0 : i1 to i32
    %c0_i32_0 = arith.constant 0 : i32
    %2 = arith.cmpi ne, %1, %c0_i32_0 : i32
    scf.if %2 {
      %cst_10 = arith.constant 0.000000e+00 : f32
      %15 = vector.broadcast %cst_10 : f32 to vector<8x128xf32>
      %c0_11 = arith.constant 0 : index
      %c0_12 = arith.constant 0 : index
      %16 = vector.load %arg5[%c0_11, %c0_12] : memref<8x128xf32, #tpu.memory_space<vmem>>, vector<8x128xf32>
      tpu.vector_store %arg5[%c0_11, %c0_12], %15 {strides = array<i32>} : memref<8x128xf32, #tpu.memory_space<vmem>>, vector<8x128xf32>,
    } else {
    }
    %c0 = arith.constant 0 : index
    %c0_1 = arith.constant 0 : index
    %3 = vector.load %arg2[%c0, %c0_1] : memref<16x128xf32, #tpu.memory_space<vmem>>, vector<16x128xf32>
    %c0_2 = arith.constant 0 : index
    %c0_3 = arith.constant 0 : index
    %4 = vector.load %arg3[%c0_2, %c0_3] : memref<16x128xf32, #tpu.memory_space<vmem>>, vector<16x128xf32>
    %5 = arith.subf %3, %4 : vector<16x128xf32>
    %6 = arith.mulf %5, %5 : vector<16x128xf32>
    %c0_4 = arith.constant 0 : index
    %c0_5 = arith.constant 0 : index
    %7 = vector.load %arg5[%c0_4, %c0_5] : memref<8x128xf32, #tpu.memory_space<vmem>>, vector<8x128xf32>
    %8 = vector.shape_cast %6 : vector<16x128xf32> to vector<2x8x128xf32>
    %cst = arith.constant dense<0.000000e+00> : vector<8x128xf32>
    %9 = vector.multi_reduction <add>, %8, %cst [0] : vector<2x8x128xf32> to vector<8x128xf32>
    %10 = arith.addf %7, %9 : vector<8x128xf32>
    %c0_6 = arith.constant 0 : index
    %c0_7 = arith.constant 0 : index
    %11 = vector.load %arg5[%c0_6, %c0_7] : memref<8x128xf32, #tpu.memory_space<vmem>>, vector<8x128xf32>
    tpu.vector_store %arg5[%c0_6, %c0_7], %10 {strides = array<i32>} : memref<8x128xf32, #tpu.memory_space<vmem>>, vector<8x128xf32>,
    %c0_i32_8 = arith.constant 0 : i32
    %12 = arith.cmpi eq, %arg1, %c0_i32_8 : i32
    %13 = arith.extui %12 : i1 to i32
    %c0_i32_9 = arith.constant 0 : i32
    %14 = arith.cmpi ne, %13, %c0_i32_9 : i32
    scf.if %14 {
      %c0_10 = arith.constant 0 : index
      %c0_11 = arith.constant 0 : index
      %15 = vector.load %arg5[%c0_10, %c0_11] : memref<8x128xf32, #tpu.memory_space<vmem>>, vector<8x128xf32>
      %cst_12 = arith.constant dense<0.000000e+00> : vector<128xf32>
      %16 = vector.multi_reduction <add>, %15, %cst_12 [0] : vector<8x128xf32> to vector<128xf32>
      %17 = vector.shape_cast %16 : vector<128xf32> to vector<1x128xf32>
      %c0_13 = arith.constant 0 : index
      %c0_14 = arith.constant 0 : index
      %18 = vector.load %arg4[%c0_13, %c0_14] : memref<1x128xf32, #tpu.memory_space<vmem>>, vector<1x128xf32>
      tpu.vector_store %arg4[%c0_13, %c0_14], %17 {strides = array<i32>} : memref<1x128xf32, #tpu.memory_space<vmem>>, vector<1x128xf32>,
    } else {
    }
    return
  }
  func.func @transform_0(%arg0: i32, %arg1: i32) -> (i32, i32) {
    %c1_i32 = arith.constant 1 : i32
    %0 = arith.muli %arg0, %c1_i32 : i32
    %1 = arith.addi %0, %arg1 : i32
    %c0_i32 = arith.constant 0 : i32
    %c0_i32_0 = arith.constant 0 : i32
    return %1, %c0_i32 : i32, i32
  }
  func.func @transform_1(%arg0: i32, %arg1: i32) -> (i32, i32) {
    %c1_i32 = arith.constant 1 : i32
    %0 = arith.muli %arg0, %c1_i32 : i32
    %1 = arith.addi %0, %arg1 : i32
    %c0_i32 = arith.constant 0 : i32
    %c0_i32_0 = arith.constant 0 : i32
    return %1, %c0_i32 : i32, i32
  }
  func.func @transform_2(%arg0: i32, %arg1: i32) -> (i32, i32) {
    %c0_i32 = arith.constant 0 : i32
    %c0_i32_0 = arith.constant 0 : i32
    return %arg0, %c0_i32 : i32, i32
  }
}

</mosaic_0001>

<bundles_post_ra>
// kernel: tpu_custom_call.1
= control target key start
LH: loop header
LB: loop body
LE: loop exit
PB: predicated region body
PF: predicated region fallthrough
CT: control target
= control target key end

     0   :  { %7 = vsyncpa [#allocation4], 0  ;;  %s229_s0 = inlined_call_operand.hbm [shape: f32[16,128], index: 0, kind: input, shape index: {}]   ;;  %s230_s1 = inlined_call_operand.hbm [shape: f32[16,128], index: 1, kind: input, shape index: {}]   ;;  %s231_s2 = inlined_call_operand.hbm [shape: f32[1,128], index: 2, kind: output, shape index: {}]  }
   0x1   :  { %8 = vsyncpa [#allocation7], 0 }
   0x2   :  { %9 = vsyncpa [#allocation5], 0  ;;  %s173_s9 = smov [#allocation3]   ;;  %s101_s13 = scalar_lea.hbm %s229_s0, 256 }
   0x3   :  { %s19_s10 = sshll.u32 %s173_s9, 4  ;;  %p102_p0 = scmp.ne.s32.totalorder %s229_s0, %s101_s13  ;;  %s20_s10 = int_to_ptr.vmem [resolvable:$true] %s19_s10 }
   0x4   :  { %p105_p1 = scmp.lt.u32.totalorder %s101_s13, %s229_s0 }
   0x6   :  { %p107_p2 = pnand %p105_p1, %p102_p0 }
   0x8   :  { %110 = shalt.err (!%p107_p2)
}
   0x9   :  { %s111_s18 = scalar_lea.vmem %s20_s10, 256  ;;  %p116_p4 = scmp.lt.s32.totalorder %s20_s10, %s20_s10 }
   0xa   :  { %p112_p3 = scmp.ne.s32.totalorder %s20_s10, %s111_s18  ;;  %p117_p5 = scmp.lt.s32.totalorder %s111_s18, %s111_s18 }
   0xc   :  { %p118_p6 = por %p117_p5, %p116_p4 }
   0xe   :  { %p119_p7 = pnand %p118_p6, %p112_p3 }
  0x10   :  { %122 = shalt.err (!%p119_p7)
}
  0x11   :  { %s174_s19 = smov 128   ;;  %s175_s20 = smov 8  }
  0x12   :  { %25 = dma.hbm_to_vmem [thread:$0]  %s229_s0, 256, %s20_s10, [#allocation4], %s174_s19, %s174_s19, %s175_s20  }
  0x13   :  { %s176_s23 = smov [#allocation6]   ;;  %s123_s27 = scalar_lea.hbm %s230_s1, 256 }
  0x14   :  { %s35_s24 = sshll.u32 %s176_s23, 4  ;;  %p124_p8 = scmp.ne.s32.totalorder %s230_s1, %s123_s27  ;;  %s36_s24 = int_to_ptr.vmem [resolvable:$true] %s35_s24 }
  0x15   :  { %p127_p9 = scmp.lt.u32.totalorder %s123_s27, %s230_s1 }
  0x17   :  { %p129_p10 = pnand %p127_p9, %p124_p8 }
  0x19   :  { %132 = shalt.err (!%p129_p10)
}
  0x1a   :  { %s133_s4 = scalar_lea.vmem %s36_s24, 256  ;;  %p138_p12 = scmp.lt.s32.totalorder %s36_s24, %s36_s24 }
  0x1b   :  { %p134_p11 = scmp.ne.s32.totalorder %s36_s24, %s133_s4  ;;  %p139_p13 = scmp.lt.s32.totalorder %s133_s4, %s133_s4 }
  0x1d   :  { %p140_p0 = por %p139_p13, %p138_p12 }
  0x1f   :  { %p141_p1 = pnand %p140_p0, %p134_p11 }
  0x21   :  { %144 = shalt.err (!%p141_p1)
}
  0x22   :  { %41 = dma.hbm_to_vmem [thread:$0]  %s230_s1, 256, %s36_s24, [#allocation7], %s174_s19, %s174_s19, %s175_s20  }
  0x23   :  { %167 = dma.done.wait [#allocation4], 256  }
  0x24   :  { %168 = vsyncadd [#allocation4], 4294967040 }
  0x25   :  { %169 = dma.done.wait [#allocation7], 256  }
  0x26   :  { %170 = vsyncadd [#allocation7], 4294967040  ;;  %v57_v0 = vld [vmem:[#allocation3] sm:$0xff]  ;;  %v58_v1 = vld [vmem:[#allocation3 + $0x8] sm:$0xff]  ;;  %s177_s6 = smov [#allocation8]  }
  0x27   :  { %v59_v2 = vld [vmem:[#allocation6] sm:$0xff]  ;;  %v60_v3 = vld [vmem:[#allocation6 + $0x8] sm:$0xff]  ;;  %s86_s7 = sshll.u32 %s177_s6, 4  ;;  %s87_s7 = int_to_ptr.vmem [resolvable:$true] %s86_s7 }
  0x28   :  { %v61_v4 = vsub.f32 %v57_v0, %v59_v2  ;;  %v62_v5 = vsub.f32 %v58_v1, %v60_v3  ;;  %s145_s1 = scalar_lea.vmem %s87_s7, 16  ;;  %s149_s8 = scalar_lea.vmem %s87_s7, 32 }
  0x29   :  { %p146_p2 = scmp.ne.s32.totalorder %s87_s7, %s145_s1  ;;  %p150_p3 = scmp.lt.s32.totalorder %s87_s7, %s87_s7 }
  0x2a   :  { %v63_v6 = vmul.f32 %v61_v4, %v61_v4  ;;  %v64_v7 = vmul.f32 %v62_v5, %v62_v5  ;;  %p151_p4 = scmp.lt.s32.totalorder %s149_s8, %s145_s1 }
  0x2c   :  { %v66_v8 = vadd.f32 %v64_v7, %v63_v6  ;;  %p152_p5 = por %p151_p4, %p150_p3 }
  0x2e   :  { %v73_v9 = vrot.slane %v66_v8, 4  ;;  %p153_p6 = pnand %p152_p5, %p146_p2 }
  0x30   :  { %v74_v10 = vadd.f32 %v73_v9, %v66_v8 }
  0x32   :  { %v75_v11 = vrot.slane %v74_v10, 2 }
  0x34   :  { %v76_v12 = vadd.f32 %v75_v11, %v74_v10 }
  0x36   :  { %v77_v13 = vrot.slane %v76_v12, 1 }
  0x38   :  { %v78_v14 = vadd.f32 %v77_v13, %v76_v12 }
  0x3a   :  { %79 = vst [vmem:[#allocation8] sm:$0x1] %v78_v14 }
  0x3b   :  { %156 = shalt.err (!%p153_p6)
}
  0x3c   :  { %s157_s11 = scalar_lea.hbm %s231_s2, 16 }
  0x3d   :  { %p158_p7 = scmp.ne.s32.totalorder %s231_s2, %s157_s11  ;;  %p161_p8 = scmp.lt.u32.totalorder %s157_s11, %s231_s2 }
  0x3f   :  { %p163_p9 = pnand %p161_p8, %p158_p7 }
  0x41   :  { %166 = shalt.err (!%p163_p9)
}
  0x42   :  { %89 = dma.vmem_to_hbm [thread:$0]  %s87_s7, 16, %s231_s2, [#allocation5]  }
  0x43   :  { %171 = dma.done.wait [#allocation5], 16  }
  0x44   :  { %172 = vsyncadd [#allocation5], 4294967280 }
  0x45   :  { %93 = vsyncpa [#allocation4], 1 }
  0x46   :  { %94 = vsyncpa [#allocation7], 1 }
  0x47   :  { %95 = vsyncpa [#allocation5], 1 }

</bundles_post_ra>
